<compile_context>
chip_gen: v5e
topology: v5e:2x2
jax: 0.10.0
libtpu: 0.0.40
codegen_flags: <defaults>
</compile_context>

<pallas_src>
import math

import jax
import jax.numpy as jnp
from jax.experimental import pallas as pl
from jax.experimental.pallas import tpu as pltpu

_SQRT_2_OVER_PI = math.sqrt(2.0 / math.pi)


def gelu_kernel(x_ref, o_ref):
    # Compute in f32 (no-op for f32 inputs; safe for bf16 on all generations).
    x = x_ref[...].astype(jnp.float32)
    inner = jnp.float32(_SQRT_2_OVER_PI) * (x + jnp.float32(0.044715) * x * x * x)
    y = jnp.float32(0.5) * x * (jnp.float32(1.0) + jnp.tanh(inner))
    o_ref[...] = y.astype(o_ref.dtype)


def _gelu_jnp(x):
    # Same tanh-approximation GELU (used for the tiny ragged tail + reference).
    xf = x.astype(jnp.float32)
    y = 0.5 * xf * (1.0 + jnp.tanh(_SQRT_2_OVER_PI * (xf + 0.044715 * xf * xf * xf)))
    return y.astype(x.dtype)


def _round_up(a, b):
    return ((a + b - 1) // b) * b


def _chip_config():
    """(target_block_bytes, vmem_limit_bytes, multi_tensorcore) per generation."""
    try:
        kind = jax.devices()[0].device_kind.lower()
    except Exception:
        kind = ""
    if "v7" in kind or "7x" in kind:
        # v7x: 64 MiB VMEM per TC, 2 TCs -> keep blocks <= 4 MiB, >= 4 steps.
        return 4 << 20, 32 << 20, True
    if any(g in kind for g in ("v6", "v5", "v4", "v3", "v2")):
        # 128 MiB VMEM parts: bigger blocks amortize per-step overhead further.
        two_tc = ("v4" in kind) or ("v3" in kind)  # megacore generations
        return 8 << 20, 64 << 20, two_tc
    # Unknown chip: conservative settings that are safe everywhere.
    return 4 << 20, 32 << 20, False


def _gelu_2d(x2, block_bytes, vmem_limit, multi_tc, sub):
    rows, cols = x2.shape
    itemsize = jnp.dtype(x2.dtype).itemsize

    # ~block_bytes per block, rounded to the packed-sublane granularity.
    tile_rows = max(sub, (block_bytes // (cols * itemsize)) // sub * sub)
    tile_rows = min(tile_rows, rows)  # == rows (full dim) is always legal

    # On 2-TensorCore chips keep >= 4 parallel steps so both cores stay busy.
    if multi_tc and rows >= 4 * sub and pl.cdiv(rows, tile_rows) < 4:
        tile_rows = max(sub, _round_up(pl.cdiv(rows, 4), sub))

    grid = (pl.cdiv(rows, tile_rows),)

    return pl.pallas_call(
        gelu_kernel,
        out_shape=jax.ShapeDtypeStruct((rows, cols), x2.dtype),
        grid_spec=pltpu.PrefetchScalarGridSpec(
            num_scalar_prefetch=0,
            grid=grid,
            in_specs=[pl.BlockSpec((tile_rows, cols), lambda i: (i, 0))],
            out_specs=pl.BlockSpec((tile_rows, cols), lambda i: (i, 0)),
        ),
        compiler_params=pltpu.CompilerParams(
            dimension_semantics=("parallel",),
            vmem_limit_bytes=vmem_limit,
        ),
    )(x2)


def gelu_pallas(x):
    orig_shape = x.shape
    n = x.size
    if n == 0:
        return x

    block_bytes, vmem_limit, multi_tc = _chip_config()
    itemsize = jnp.dtype(x.dtype).itemsize
    # Packed sublane granularity: 8 (f32), 16 (bf16), 32 (int8/fp8).
    sub = max(8, 32 // itemsize)

    # Fast path: trailing dims already lane/sublane aligned (common NN case,
    # e.g. (..., seq, hidden)).  Collapse leading dims only: copy-free, no pad,
    # no tail.
    if (x.ndim >= 2
            and orig_shape[-1] % 128 == 0
            and orig_shape[-2] % sub == 0
            and orig_shape[-1] * itemsize * sub <= block_bytes):
        cols = orig_shape[-1]
        rows = n // cols
        out = _gelu_2d(jnp.reshape(x, (rows, cols)),
                       block_bytes, vmem_limit, multi_tc, sub)
        return jnp.reshape(out, orig_shape)

    xf = jnp.reshape(x, (n,))

    # General aligned path: total size divisible by 128 -> widest lane-dense
    # column count that divides n exactly; pure reshape, no pad / slice passes.
    if n % 128 == 0:
        cols = 128
        for c in (1024, 512, 256):
            if n % c == 0:
                cols = c
                break
        rows = n // cols
        out = _gelu_2d(jnp.reshape(xf, (rows, cols)),
                       block_bytes, vmem_limit, multi_tc, sub)
        return jnp.reshape(out, orig_shape)

    # Ragged path (rare): Pallas on the largest 128-aligned prefix, plain jnp
    # for the < 128-element tail (negligible traffic).
    n_main = (n // 128) * 128
    parts = []
    if n_main > 0:
        main = _gelu_2d(jnp.reshape(xf[:n_main], (n_main // 128, 128)),
                        block_bytes, vmem_limit, multi_tc, sub)
        parts.append(jnp.reshape(main, (n_main,)))
    parts.append(_gelu_jnp(xf[n_main:]))
    return jnp.reshape(jnp.concatenate(parts), orig_shape)


if __name__ == "__main__":
    key = jax.random.PRNGKey(0)
    x = jax.random.normal(key, (2, 4, 16, 16), dtype=jnp.float32)

    y = gelu_pallas(x)
    jax.block_until_ready(y)
    y_ref = _gelu_jnp(x)
    assert y.shape == x.shape and y.dtype == x.dtype
    assert jnp.allclose(y, y_ref, atol=1e-5, rtol=1e-5)

    # Exercise the lane-aligned fast path and the ragged-tail path too.
    x2 = jax.random.normal(jax.random.PRNGKey(1), (2, 8, 128), dtype=jnp.float32)
    y2 = gelu_pallas(x2)
    jax.block_until_ready(y2)
    assert jnp.allclose(y2, _gelu_jnp(x2), atol=1e-5, rtol=1e-5)

    x3 = jax.random.normal(jax.random.PRNGKey(2), (3, 43), dtype=jnp.float32)
    y3 = gelu_pallas(x3)
    jax.block_until_ready(y3)
    assert jnp.allclose(y3, _gelu_jnp(x3), atol=1e-5, rtol=1e-5)

    print("KERNEL_OK")
</pallas_src>

<mosaic_0001>
module attributes {stable_mosaic.version = 11 : i64} {
  func.func @gelu_kernel(%arg0: i32, %arg1: memref<2x1024xf32, #tpu.memory_space<vmem>>, %arg2: memref<2x1024xf32, #tpu.memory_space<vmem>>) attributes {dimension_semantics = [#tpu.dimension_semantics<parallel>], iteration_bounds = array<i64: 1>, scalar_prefetch = 0 : i64, scratch_operands = 0 : i64, tpu.core_type = #tpu.core_type<tc>, window_params = [{transform_indices = @transform_0, window_bounds = array<i64: 2, 1024>}, {transform_indices = @transform_1, window_bounds = array<i64: 2, 1024>}]} {
    %c0 = arith.constant 0 : index
    %c0_0 = arith.constant 0 : index
    %0 = vector.load %arg1[%c0, %c0_0] : memref<2x1024xf32, #tpu.memory_space<vmem>>, vector<2x1024xf32>
    %cst = arith.constant 4.471500e-02 : f32
    %1 = vector.broadcast %cst : f32 to vector<2x1024xf32>
    %2 = arith.mulf %1, %0 : vector<2x1024xf32>
    %3 = arith.mulf %2, %0 : vector<2x1024xf32>
    %4 = arith.mulf %3, %0 : vector<2x1024xf32>
    %5 = arith.addf %0, %4 : vector<2x1024xf32>
    %cst_1 = arith.constant 0.797884583 : f32
    %6 = vector.broadcast %cst_1 : f32 to vector<2x1024xf32>
    %7 = arith.mulf %6, %5 : vector<2x1024xf32>
    %cst_2 = arith.constant 5.000000e-01 : f32
    %8 = vector.broadcast %cst_2 : f32 to vector<2x1024xf32>
    %9 = arith.mulf %8, %0 : vector<2x1024xf32>
    %10 = math.tanh %7 : vector<2x1024xf32>
    %cst_3 = arith.constant 1.000000e+00 : f32
    %11 = vector.broadcast %cst_3 : f32 to vector<2x1024xf32>
    %12 = arith.addf %11, %10 : vector<2x1024xf32>
    %13 = arith.mulf %9, %12 : vector<2x1024xf32>
    %c0_4 = arith.constant 0 : index
    %c0_5 = arith.constant 0 : index
    %14 = vector.load %arg2[%c0_4, %c0_5] : memref<2x1024xf32, #tpu.memory_space<vmem>>, vector<2x1024xf32>
    tpu.vector_store %arg2[%c0_4, %c0_5], %13 {strides = array<i32>} : memref<2x1024xf32, #tpu.memory_space<vmem>>, vector<2x1024xf32>,
    return
  }
  func.func @transform_0(%arg0: i32) -> (i32, i32) {
    %c0_i32 = arith.constant 0 : i32
    %c0_i32_0 = arith.constant 0 : i32
    return %arg0, %c0_i32 : i32, i32
  }
  func.func @transform_1(%arg0: i32) -> (i32, i32) {
    %c0_i32 = arith.constant 0 : i32
    %c0_i32_0 = arith.constant 0 : i32
    return %arg0, %c0_i32 : i32, i32
  }
}

</mosaic_0001>

<bundles_post_ra>
// kernel: tpu_custom_call.1
= control target key start
LH: loop header
LB: loop body
LE: loop exit
PB: predicated region body
PF: predicated region fallthrough
CT: control target
= control target key end

     0   :  { %6 = vsyncpa [#allocation3], 0  ;;  %s138_s0 = inlined_call_operand.hbm [shape: f32[2,1024], index: 0, kind: input, shape index: {}]   ;;  %s139_s1 = inlined_call_operand.hbm [shape: f32[2,1024], index: 1, kind: output, shape index: {}]  }
   0x1   :  { %7 = vsyncpa [#allocation4], 0  ;;  %s13_s8 = sshll.u32 %s138_s0, 4  ;;  %s120_s9 = smov [#allocation2]   ;;  %s14_s8 = int_to_ptr.hbm [resolvable:$true] %s13_s8 }
   0x2   :  { %s15_s10 = sshll.u32 %s120_s9, 4  ;;  %s16_s10 = int_to_ptr.vmem [resolvable:$true] %s15_s10 }
   0x3   :  { %18 = dma.hbm_to_vmem [thread:$0]  %s14_s8, 256, %s16_s10, [#allocation3]  }
   0x4   :  { %116 = dma.done.wait [#allocation3], 256  }
   0x5   :  { %117 = vsyncadd [#allocation3], 4294967040  ;;  %v23_v0 = vld [vmem:[#allocation2] sm:$0xff]  ;;  %v24_v1 = vld [vmem:[#allocation2 + $0x8] sm:$0xff]  ;;  %s121_s0 = smov [#allocation5]   ;;  %s52_s14 = sshll.u32 %s139_s1, 4  ;;  %s53_s14 = int_to_ptr.hbm [resolvable:$true] %s52_s14 }
   0x6   :  { %v25_v2 = vmul.f32 0.044715, %v23_v0  ;;  %v26_v3 = vmul.f32 0.044715, %v24_v1  ;;  %v35_v12 = vmul.f32 0.5, %v23_v0  ;;  %v36_v14 = vmul.f32 0.5, %v24_v1 }
   0x7   :  { %s50_s11 = sshll.u32 %s121_s0, 4  ;;  %s51_s11 = int_to_ptr.vmem [resolvable:$true] %s50_s11 }
   0x8   :  { %v27_v4 = vmul.f32 %v25_v2, %v23_v0  ;;  %v28_v5 = vmul.f32 %v26_v3, %v24_v1 }
   0xa   :  { %v29_v6 = vmul.f32 %v27_v4, %v23_v0  ;;  %v30_v7 = vmul.f32 %v28_v5, %v24_v1 }
   0xc   :  { %v31_v8 = vadd.f32 %v29_v6, %v23_v0  ;;  %v32_v9 = vadd.f32 %v30_v7, %v24_v1 }
   0xe   :  { %v33_v10 = vmul.f32 0.7978846, %v31_v8  ;;  %v34_v11 = vmul.f32 0.7978846, %v32_v9 }
  0x10   :  { %64 = vtanh.f32 %v33_v10 }
  0x11   :  { %66 = vtanh.f32 %v34_v11 }
  0x16   :  { %v65_v13 = vpop.eup %64 }
  0x17   :  { %v67_v15 = vpop.eup %66  ;;  %v39_v16 = vadd.f32 1.0, %v65_v13 }
  0x18   :  { %v40_v17 = vadd.f32 1.0, %v67_v15 }
  0x19   :  { %v41_v18 = vmul.f32 %v39_v16, %v35_v12 }
  0x1a   :  { %v42_v19 = vmul.f32 %v40_v17, %v36_v14 }
  0x1b   :  { %43 = vst [vmem:[#allocation5] sm:$0xff] %v41_v18 }
  0x1c   :  { %44 = vst [vmem:[#allocation5 + $0x8] sm:$0xff] %v42_v19 }
  0x1d   :  { %55 = dma.vmem_to_hbm [thread:$0]  %s51_s11, 256, %s53_s14, [#allocation4]  }
  0x1e   :  { %118 = dma.done.wait [#allocation4], 256  }
  0x1f   :  { %119 = vsyncadd [#allocation4], 4294967040 }
  0x20   :  { %60 = vsyncpa [#allocation3], 1 }
  0x21   :  { %61 = vsyncpa [#allocation4], 1 }

</bundles_post_ra>
